<compile_context>
chip_gen: v7x
topology: tpu7x:2x2x1
jax: 0.10.0
libtpu: 0.0.40
codegen_flags: <defaults>
</compile_context>

<pallas_src>
import functools
import math

import numpy as np
import jax
import jax.numpy as jnp
from jax import lax
from jax.experimental import pallas as pl
from jax.experimental.pallas import tpu as pltpu


def _round_up(x, m):
    return ((x + m - 1) // m) * m


# ---------------------------------------------------------------------------
# Weight generation (EigenMatrixGenerator.generate) -- plain-JAX glue
# ---------------------------------------------------------------------------
def _softplus(x):
    return jnp.logaddexp(x, 0.0)


def generate_reservoir_weights(key, n, leaky_rate, dt=1.0):
    """Replicates EigenMatrixGenerator.generate() deterministically."""
    G = n * n
    S = 3 * G
    c0, crr = 300.0, 0.8
    dc = -250.0 / n

    cols = jnp.arange(n, dtype=jnp.float32)
    c_init = c0 * jnp.ones((n, n), jnp.float32) + dc * (cols - 1.0)[None, :]
    key, kc = jax.random.split(key)
    c_init = c_init - crr * jax.random.uniform(kc, (n, n), jnp.float32) * c_init

    k_param = jnp.zeros((n, n), jnp.float32)
    kp_param = 1e-4 * jnp.ones((n, n), jnp.float32)
    # dx / dy params exist in the module but are unused in A/W construction.

    c_pos = _softplus(c_init).reshape(-1)
    k_x = _softplus(k_param).reshape(-1)
    kp = _softplus(kp_param).reshape(-1)

    xi = jnp.float32(np.pi / 2.0)
    lambda1 = 1.0 / (1.0 + dt * k_x)
    real_part = 0.5 * (1.0 / (1.0 + dt * kp) + 1.0 / (1.0 + dt * k_x))
    imag_part = c_pos * dt * xi / jnp.sqrt((1.0 + dt * kp) * (1.0 + dt * k_x))
    lambda2 = lax.complex(real_part, imag_part)
    lambda3 = lax.complex(real_part, -imag_part)

    Lambda = jnp.concatenate(
        [lambda1.astype(jnp.complex64), lambda2, lambda3], axis=0)

    beta = dt / (1.0 + dt * k_x)
    alpha = lambda2 - lambda1.astype(jnp.complex64) + 1e-6
    v2_2 = beta.astype(jnp.complex64) * 1j * xi / alpha
    v2_3 = v2_2
    v3_2 = -jnp.conj(v2_2)
    v3_3 = -jnp.conj(v2_3)
    ones_c = jnp.ones((G,), jnp.complex64)

    idx = jnp.arange(G)
    P = jnp.zeros((S, S), jnp.complex64)
    P = P.at[0 * G + idx, 0 * G + idx].set(ones_c)
    P = P.at[0 * G + idx, 1 * G + idx].set(ones_c)
    P = P.at[0 * G + idx, 2 * G + idx].set(ones_c)
    P = P.at[1 * G + idx, 1 * G + idx].set(v2_2)
    P = P.at[2 * G + idx, 1 * G + idx].set(v2_3)
    P = P.at[1 * G + idx, 2 * G + idx].set(v3_2)
    P = P.at[2 * G + idx, 2 * G + idx].set(v3_3)
    P_inv = jnp.conj(P).T  # module uses conjugate transpose as "inverse"

    A = jnp.real(P @ jnp.diag(Lambda) @ P_inv).astype(jnp.float32)
    W = (A - (1.0 - leaky_rate) * jnp.eye(S, dtype=jnp.float32)) / leaky_rate
    return A, W


# ---------------------------------------------------------------------------
# Pallas kernel: batched leaky-ESN recurrence (serial scan over T chunks)
# ---------------------------------------------------------------------------
def esn_recurrence_kernel(x_ref, win_ref, a_ref, states_ref, x_carry, *,
                          chunk):
    # x_ref:      (chunk, Bp, Dp)  augmented input slab for this T chunk
    #                              (last column of the un-padded part is 1.0,
    #                               so the bias is folded into win_ref)
    # win_ref:    (Dp, Rp)         a * [Win ; b_res], zero-padded
    # a_ref:      (Rp, Rp)         effective transition (1-a)I + a*W_res, padded
    # states_ref: (chunk, Bp, Rp)  reservoir states for this chunk (output)
    # x_carry:    (Bp, Rp)         VMEM scratch: state carried across grid steps
    @pl.when(pl.program_id(0) == 0)
    def _():
        x_carry[...] = jnp.zeros_like(x_carry)

    A = a_ref[...]
    Win = win_ref[...]

    def step(t, x):
        # Input projection is independent of the carried state, so it
        # overlaps with the previous step's recurrence matmul.
        u_t = jnp.dot(x_ref[t], Win, preferred_element_type=jnp.float32)
        x = jnp.dot(x, A, preferred_element_type=jnp.float32) + u_t
        states_ref[t] = x
        return x

    if chunk <= 16:
        # Small chunk: fully unrolled static loop, state stays in vregs.
        x = x_carry[...]
        for t in range(chunk):
            x = step(t, x)
        x_carry[...] = x
    else:
        # Large chunk: bounded unroll keeps code size sane as T grows.
        x_carry[...] = lax.fori_loop(0, chunk, step, x_carry[...], unroll=8)


@jax.jit
def esn_forward(x, Win, b_res, W_res, W_out, leaky_rate):
    """Pallas-backed implementation of SimpleESN.forward -> (outputs, states)."""
    B, T, D = x.shape
    R = W_res.shape[0]
    a = jnp.float32(leaky_rate)

    # Padded working shapes: full (8,128) vregs and an exact 128-wide MXU tile.
    Bp = max(8, _round_up(B, 8))
    Rp = max(128, _round_up(R, 128))
    Dp = max(8, _round_up(D + 1, 8))

    # T chunking: grid axis over chunks, serial ("arbitrary").
    chunk = min(T, 256)
    Tp = _round_up(T, chunk)
    num_chunks = Tp // chunk

    # Effective transition A = (1-a) I + a W_res, zero-padded so padded state
    # lanes stay exactly zero.
    A_eff = (1.0 - a) * jnp.eye(R, dtype=jnp.float32) + a * W_res.astype(jnp.float32)
    A_pad = jnp.pad(A_eff, ((0, Rp - R), (0, Rp - R)))

    # Fold bias into the input weights via an augmented ones-column, pre-scale
    # by the leaky rate, and zero-pad: u_t = x_aug_t @ (a*[Win; b]).
    win_aug = jnp.concatenate(
        [Win.astype(jnp.float32), b_res.astype(jnp.float32)[None, :]], axis=0)
    win_aug = a * win_aug
    win_pad = jnp.pad(win_aug, ((0, Dp - (D + 1)), (0, Rp - R)))

    # Augmented, padded input, laid out (T, B, D) so each per-step slab
    # x_ref[t] is a contiguous (Bp, Dp) block.
    x_aug = jnp.concatenate(
        [x.astype(jnp.float32), jnp.ones((B, T, 1), jnp.float32)], axis=-1)
    x_aug = jnp.pad(x_aug, ((0, Bp - B), (0, Tp - T), (0, Dp - (D + 1))))
    x_tbd = jnp.transpose(x_aug, (1, 0, 2))  # (Tp, Bp, Dp)

    # Explicit VMEM budget (double-buffered x + states blocks, weights, carry),
    # capped well inside v5e's 16 MiB scoped limit.
    block_bytes = (2 * chunk * Bp * Dp * 4 + 2 * chunk * Bp * Rp * 4
                   + 2 * Dp * Rp * 4 + 2 * Rp * Rp * 4 + Bp * Rp * 4)
    vmem_limit = int(min(max(4 * block_bytes, 4 * 1024 * 1024),
                         14 * 1024 * 1024))

    kernel = functools.partial(esn_recurrence_kernel, chunk=chunk)
    states_p = pl.pallas_call(
        kernel,
        out_shape=jax.ShapeDtypeStruct((Tp, Bp, Rp), jnp.float32),
        grid_spec=pltpu.PrefetchScalarGridSpec(
            num_scalar_prefetch=0,
            grid=(num_chunks,),
            in_specs=[
                pl.BlockSpec((chunk, Bp, Dp), lambda i: (i, 0, 0)),  # x_aug
                pl.BlockSpec((Dp, Rp), lambda i: (0, 0)),            # a*[Win;b]
                pl.BlockSpec((Rp, Rp), lambda i: (0, 0)),            # A_eff
            ],
            out_specs=pl.BlockSpec((chunk, Bp, Rp), lambda i: (i, 0, 0)),
            scratch_shapes=[pltpu.VMEM((Bp, Rp), jnp.float32)],      # x carry
        ),
        compiler_params=pltpu.CompilerParams(
            dimension_semantics=("arbitrary",),
            vmem_limit_bytes=vmem_limit),
    )(x_tbd, win_pad, A_pad)

    # Un-pad and restore (B, T, R).
    states = jnp.transpose(states_p[:T, :B, :R], (1, 0, 2))

    # Readout outside the kernel: one lane-dense batched matmul over all B*T
    # rows instead of an O=3 lane-sparse output block inside the kernel.
    outputs = jnp.einsum("btr,or->bto", states, W_out,
                         preferred_element_type=jnp.float32)
    return outputs, states


# ---------------------------------------------------------------------------
# Pure-JAX reference (mirrors the PyTorch forward loop)
# ---------------------------------------------------------------------------
def esn_forward_ref(x, Win, b_res, W_res, W_out, a):
    R = W_res.shape[0]

    def per_batch(xb):
        u = xb @ Win + b_res                       # (T, R)

        def step(xp, ut):
            xt = (1.0 - a) * xp + a * (ut + xp @ W_res)
            return xt, xt

        _, states = lax.scan(step, jnp.zeros((R,), jnp.float32), u)
        out = states @ W_out.T
        return out, states

    return jax.vmap(per_batch)(x)


# ---------------------------------------------------------------------------
if __name__ == "__main__":
    key = jax.random.PRNGKey(0)

    # Small shapes consistent with the module.
    n_grid = 4
    G = n_grid * n_grid
    R = 3 * G                       # actual reservoir state size = 48
    D = 4                           # input_dim
    O = 3                           # output_dim
    B, T = 2, 8                     # batch, seq_len
    leaky_rate = 0.03

    key, kgen = jax.random.split(key)
    A, W_res = generate_reservoir_weights(kgen, n_grid, leaky_rate)

    # Win / W_out: xavier-uniform style deterministic init; b_res = zeros.
    key, k1, k2, k3 = jax.random.split(key, 4)
    lim_in = math.sqrt(6.0 / (D + R))
    Win = jax.random.uniform(k1, (D, R), jnp.float32, -lim_in, lim_in)
    lim_out = math.sqrt(6.0 / (O + R))
    W_out = jax.random.uniform(k2, (O, R), jnp.float32, -lim_out, lim_out)
    b_res = jnp.zeros((R,), jnp.float32)

    x = jax.random.normal(k3, (B, T, D), jnp.float32)

    outputs, states = esn_forward(x, Win, b_res, W_res, W_out, leaky_rate)
    jax.block_until_ready((outputs, states))

    ref_out, ref_states = esn_forward_ref(x, Win, b_res, W_res, W_out,
                                          leaky_rate)
    jax.block_until_ready((ref_out, ref_states))

    assert outputs.shape == (B, T, O) and states.shape == (B, T, R)
    assert bool(jnp.all(jnp.isfinite(outputs))) and bool(
        jnp.all(jnp.isfinite(states)))

    def rel_err(a_, b_):
        return float(jnp.max(jnp.abs(a_ - b_)) /
                     (jnp.max(jnp.abs(b_)) + 1e-6))

    assert rel_err(states, ref_states) < 5e-2
    assert rel_err(outputs, ref_out) < 5e-2

    print("KERNEL_OK")
</pallas_src>

<mosaic_0001>
module attributes {stable_mosaic.version = 11 : i64} {
  func.func @esn_recurrence_kernel(%arg0: i32, %arg1: memref<8x8x8xf32, #tpu.memory_space<vmem>>, %arg2: memref<8x128xf32, #tpu.memory_space<vmem>>, %arg3: memref<128x128xf32, #tpu.memory_space<vmem>>, %arg4: memref<8x8x128xf32, #tpu.memory_space<vmem>>, %arg5: memref<8x128xf32, #tpu.memory_space<vmem>>) attributes {dimension_semantics = [#tpu.dimension_semantics<arbitrary>], iteration_bounds = array<i64: 1>, scalar_prefetch = 0 : i64, scratch_operands = 1 : i64, tpu.core_type = #tpu.core_type<tc>, window_params = [{transform_indices = @transform_0, window_bounds = array<i64: 8, 8, 8>}, {pipeline_mode = #tpu.pipeline_mode<synchronous>, transform_indices = @transform_1, window_bounds = array<i64: 8, 128>}, {pipeline_mode = #tpu.pipeline_mode<synchronous>, transform_indices = @transform_2, window_bounds = array<i64: 128, 128>}, {transform_indices = @transform_3, window_bounds = array<i64: 8, 8, 128>}]} {
    %c0_i32 = arith.constant 0 : i32
    %0 = arith.cmpi eq, %arg0, %c0_i32 : i32
    %1 = arith.extui %0 : i1 to i32
    %c0_i32_0 = arith.constant 0 : i32
    %2 = arith.cmpi ne, %1, %c0_i32_0 : i32
    scf.if %2 {
      %cst_64 = arith.constant 0.000000e+00 : f32
      %71 = vector.broadcast %cst_64 : f32 to vector<8x128xf32>
      %c0_65 = arith.constant 0 : index
      %c0_66 = arith.constant 0 : index
      %72 = vector.load %arg5[%c0_65, %c0_66] : memref<8x128xf32, #tpu.memory_space<vmem>>, vector<8x128xf32>
      tpu.vector_store %arg5[%c0_65, %c0_66], %71 {strides = array<i32>} : memref<8x128xf32, #tpu.memory_space<vmem>>, vector<8x128xf32>,
    } else {
    }
    %c0 = arith.constant 0 : index
    %c0_1 = arith.constant 0 : index
    %3 = vector.load %arg3[%c0, %c0_1] : memref<128x128xf32, #tpu.memory_space<vmem>>, vector<128x128xf32>
    %c0_2 = arith.constant 0 : index
    %c0_3 = arith.constant 0 : index
    %4 = vector.load %arg2[%c0_2, %c0_3] : memref<8x128xf32, #tpu.memory_space<vmem>>, vector<8x128xf32>
    %c0_4 = arith.constant 0 : index
    %c0_5 = arith.constant 0 : index
    %5 = vector.load %arg5[%c0_4, %c0_5] : memref<8x128xf32, #tpu.memory_space<vmem>>, vector<8x128xf32>
    %c0_6 = arith.constant 0 : index
    %c0_7 = arith.constant 0 : index
    %c0_8 = arith.constant 0 : index
    %6 = vector.load %arg1[%c0_6, %c0_7, %c0_8] : memref<8x8x8xf32, #tpu.memory_space<vmem>>, vector<1x8x8xf32>
    %7 = vector.shape_cast %6 : vector<1x8x8xf32> to vector<8x8xf32>
    %cst = arith.constant dense<0.000000e+00> : vector<8x128xf32>
    %8 = tpu.matmul %7, %4, %cst {dimension_numbers = #tpu.dot_dimension_numbers<[1], [0], [0], [1], [0, 0, 1, 1], [], []>} : vector<8x8xf32>, vector<8x128xf32>, vector<8x128xf32> -> vector<8x128xf32>
    %cst_9 = arith.constant dense<0.000000e+00> : vector<8x128xf32>
    %9 = tpu.matmul %5, %3, %cst_9 {dimension_numbers = #tpu.dot_dimension_numbers<[1], [0], [0], [1], [0, 0, 1, 1], [], []>} : vector<8x128xf32>, vector<128x128xf32>, vector<8x128xf32> -> vector<8x128xf32>
    %10 = arith.addf %9, %8 : vector<8x128xf32>
    %c0_10 = arith.constant 0 : index
    %c0_11 = arith.constant 0 : index
    %c0_12 = arith.constant 0 : index
    %11 = vector.load %arg4[%c0_10, %c0_11, %c0_12] : memref<8x8x128xf32, #tpu.memory_space<vmem>>, vector<1x8x128xf32>
    %12 = vector.shape_cast %11 : vector<1x8x128xf32> to vector<8x128xf32>
    %13 = vector.shape_cast %10 : vector<8x128xf32> to vector<1x8x128xf32>
    tpu.vector_store %arg4[%c0_10, %c0_11, %c0_12], %13 {strides = array<i32>} : memref<8x8x128xf32, #tpu.memory_space<vmem>>, vector<1x8x128xf32>,
    %c1 = arith.constant 1 : index
    %c0_13 = arith.constant 0 : index
    %c0_14 = arith.constant 0 : index
    %14 = vector.load %arg1[%c1, %c0_13, %c0_14] : memref<8x8x8xf32, #tpu.memory_space<vmem>>, vector<1x8x8xf32>
    %15 = vector.shape_cast %14 : vector<1x8x8xf32> to vector<8x8xf32>
    %cst_15 = arith.constant dense<0.000000e+00> : vector<8x128xf32>
    %16 = tpu.matmul %15, %4, %cst_15 {dimension_numbers = #tpu.dot_dimension_numbers<[1], [0], [0], [1], [0, 0, 1, 1], [], []>} : vector<8x8xf32>, vector<8x128xf32>, vector<8x128xf32> -> vector<8x128xf32>
    %cst_16 = arith.constant dense<0.000000e+00> : vector<8x128xf32>
    %17 = tpu.matmul %10, %3, %cst_16 {dimension_numbers = #tpu.dot_dimension_numbers<[1], [0], [0], [1], [0, 0, 1, 1], [], []>} : vector<8x128xf32>, vector<128x128xf32>, vector<8x128xf32> -> vector<8x128xf32>
    %18 = arith.addf %17, %16 : vector<8x128xf32>
    %c1_17 = arith.constant 1 : index
    %c0_18 = arith.constant 0 : index
    %c0_19 = arith.constant 0 : index
    %19 = vector.load %arg4[%c1_17, %c0_18, %c0_19] : memref<8x8x128xf32, #tpu.memory_space<vmem>>, vector<1x8x128xf32>
    %20 = vector.shape_cast %19 : vector<1x8x128xf32> to vector<8x128xf32>
    %21 = vector.shape_cast %18 : vector<8x128xf32> to vector<1x8x128xf32>
    tpu.vector_store %arg4[%c1_17, %c0_18, %c0_19], %21 {strides = array<i32>} : memref<8x8x128xf32, #tpu.memory_space<vmem>>, vector<1x8x128xf32>,
    %c2 = arith.constant 2 : index
    %c0_20 = arith.constant 0 : index
    %c0_21 = arith.constant 0 : index
    %22 = vector.load %arg1[%c2, %c0_20, %c0_21] : memref<8x8x8xf32, #tpu.memory_space<vmem>>, vector<1x8x8xf32>
    %23 = vector.shape_cast %22 : vector<1x8x8xf32> to vector<8x8xf32>
    %cst_22 = arith.constant dense<0.000000e+00> : vector<8x128xf32>
    %24 = tpu.matmul %23, %4, %cst_22 {dimension_numbers = #tpu.dot_dimension_numbers<[1], [0], [0], [1], [0, 0, 1, 1], [], []>} : vector<8x8xf32>, vector<8x128xf32>, vector<8x128xf32> -> vector<8x128xf32>
    %cst_23 = arith.constant dense<0.000000e+00> : vector<8x128xf32>
    %25 = tpu.matmul %18, %3, %cst_23 {dimension_numbers = #tpu.dot_dimension_numbers<[1], [0], [0], [1], [0, 0, 1, 1], [], []>} : vector<8x128xf32>, vector<128x128xf32>, vector<8x128xf32> -> vector<8x128xf32>
    %26 = arith.addf %25, %24 : vector<8x128xf32>
    %c2_24 = arith.constant 2 : index
    %c0_25 = arith.constant 0 : index
    %c0_26 = arith.constant 0 : index
    %27 = vector.load %arg4[%c2_24, %c0_25, %c0_26] : memref<8x8x128xf32, #tpu.memory_space<vmem>>, vector<1x8x128xf32>
    %28 = vector.shape_cast %27 : vector<1x8x128xf32> to vector<8x128xf32>
    %29 = vector.shape_cast %26 : vector<8x128xf32> to vector<1x8x128xf32>
    tpu.vector_store %arg4[%c2_24, %c0_25, %c0_26], %29 {strides = array<i32>} : memref<8x8x128xf32, #tpu.memory_space<vmem>>, vector<1x8x128xf32>,
    %c3 = arith.constant 3 : index
    %c0_27 = arith.constant 0 : index
    %c0_28 = arith.constant 0 : index
    %30 = vector.load %arg1[%c3, %c0_27, %c0_28] : memref<8x8x8xf32, #tpu.memory_space<vmem>>, vector<1x8x8xf32>
    %31 = vector.shape_cast %30 : vector<1x8x8xf32> to vector<8x8xf32>
    %cst_29 = arith.constant dense<0.000000e+00> : vector<8x128xf32>
    %32 = tpu.matmul %31, %4, %cst_29 {dimension_numbers = #tpu.dot_dimension_numbers<[1], [0], [0], [1], [0, 0, 1, 1], [], []>} : vector<8x8xf32>, vector<8x128xf32>, vector<8x128xf32> -> vector<8x128xf32>
    %cst_30 = arith.constant dense<0.000000e+00> : vector<8x128xf32>
    %33 = tpu.matmul %26, %3, %cst_30 {dimension_numbers = #tpu.dot_dimension_numbers<[1], [0], [0], [1], [0, 0, 1, 1], [], []>} : vector<8x128xf32>, vector<128x128xf32>, vector<8x128xf32> -> vector<8x128xf32>
    %34 = arith.addf %33, %32 : vector<8x128xf32>
    %c3_31 = arith.constant 3 : index
    %c0_32 = arith.constant 0 : index
    %c0_33 = arith.constant 0 : index
    %35 = vector.load %arg4[%c3_31, %c0_32, %c0_33] : memref<8x8x128xf32, #tpu.memory_space<vmem>>, vector<1x8x128xf32>
    %36 = vector.shape_cast %35 : vector<1x8x128xf32> to vector<8x128xf32>
    %37 = vector.shape_cast %34 : vector<8x128xf32> to vector<1x8x128xf32>
    tpu.vector_store %arg4[%c3_31, %c0_32, %c0_33], %37 {strides = array<i32>} : memref<8x8x128xf32, #tpu.memory_space<vmem>>, vector<1x8x128xf32>,
    %c4 = arith.constant 4 : index
    %c0_34 = arith.constant 0 : index
    %c0_35 = arith.constant 0 : index
    %38 = vector.load %arg1[%c4, %c0_34, %c0_35] : memref<8x8x8xf32, #tpu.memory_space<vmem>>, vector<1x8x8xf32>
    %39 = vector.shape_cast %38 : vector<1x8x8xf32> to vector<8x8xf32>
    %cst_36 = arith.constant dense<0.000000e+00> : vector<8x128xf32>
    %40 = tpu.matmul %39, %4, %cst_36 {dimension_numbers = #tpu.dot_dimension_numbers<[1], [0], [0], [1], [0, 0, 1, 1], [], []>} : vector<8x8xf32>, vector<8x128xf32>, vector<8x128xf32> -> vector<8x128xf32>
    %cst_37 = arith.constant dense<0.000000e+00> : vector<8x128xf32>
    %41 = tpu.matmul %34, %3, %cst_37 {dimension_numbers = #tpu.dot_dimension_numbers<[1], [0], [0], [1], [0, 0, 1, 1], [], []>} : vector<8x128xf32>, vector<128x128xf32>, vector<8x128xf32> -> vector<8x128xf32>
    %42 = arith.addf %41, %40 : vector<8x128xf32>
    %c4_38 = arith.constant 4 : index
    %c0_39 = arith.constant 0 : index
    %c0_40 = arith.constant 0 : index
    %43 = vector.load %arg4[%c4_38, %c0_39, %c0_40] : memref<8x8x128xf32, #tpu.memory_space<vmem>>, vector<1x8x128xf32>
    %44 = vector.shape_cast %43 : vector<1x8x128xf32> to vector<8x128xf32>
    %45 = vector.shape_cast %42 : vector<8x128xf32> to vector<1x8x128xf32>
    tpu.vector_store %arg4[%c4_38, %c0_39, %c0_40], %45 {strides = array<i32>} : memref<8x8x128xf32, #tpu.memory_space<vmem>>, vector<1x8x128xf32>,
    %c5 = arith.constant 5 : index
    %c0_41 = arith.constant 0 : index
    %c0_42 = arith.constant 0 : index
    %46 = vector.load %arg1[%c5, %c0_41, %c0_42] : memref<8x8x8xf32, #tpu.memory_space<vmem>>, vector<1x8x8xf32>
    %47 = vector.shape_cast %46 : vector<1x8x8xf32> to vector<8x8xf32>
    %cst_43 = arith.constant dense<0.000000e+00> : vector<8x128xf32>
    %48 = tpu.matmul %47, %4, %cst_43 {dimension_numbers = #tpu.dot_dimension_numbers<[1], [0], [0], [1], [0, 0, 1, 1], [], []>} : vector<8x8xf32>, vector<8x128xf32>, vector<8x128xf32> -> vector<8x128xf32>
    %cst_44 = arith.constant dense<0.000000e+00> : vector<8x128xf32>
    %49 = tpu.matmul %42, %3, %cst_44 {dimension_numbers = #tpu.dot_dimension_numbers<[1], [0], [0], [1], [0, 0, 1, 1], [], []>} : vector<8x128xf32>, vector<128x128xf32>, vector<8x128xf32> -> vector<8x128xf32>
    %50 = arith.addf %49, %48 : vector<8x128xf32>
    %c5_45 = arith.constant 5 : index
    %c0_46 = arith.constant 0 : index
    %c0_47 = arith.constant 0 : index
    %51 = vector.load %arg4[%c5_45, %c0_46, %c0_47] : memref<8x8x128xf32, #tpu.memory_space<vmem>>, vector<1x8x128xf32>
    %52 = vector.shape_cast %51 : vector<1x8x128xf32> to vector<8x128xf32>
    %53 = vector.shape_cast %50 : vector<8x128xf32> to vector<1x8x128xf32>
    tpu.vector_store %arg4[%c5_45, %c0_46, %c0_47], %53 {strides = array<i32>} : memref<8x8x128xf32, #tpu.memory_space<vmem>>, vector<1x8x128xf32>,
    %c6 = arith.constant 6 : index
    %c0_48 = arith.constant 0 : index
    %c0_49 = arith.constant 0 : index
    %54 = vector.load %arg1[%c6, %c0_48, %c0_49] : memref<8x8x8xf32, #tpu.memory_space<vmem>>, vector<1x8x8xf32>
    %55 = vector.shape_cast %54 : vector<1x8x8xf32> to vector<8x8xf32>
    %cst_50 = arith.constant dense<0.000000e+00> : vector<8x128xf32>
    %56 = tpu.matmul %55, %4, %cst_50 {dimension_numbers = #tpu.dot_dimension_numbers<[1], [0], [0], [1], [0, 0, 1, 1], [], []>} : vector<8x8xf32>, vector<8x128xf32>, vector<8x128xf32> -> vector<8x128xf32>
    %cst_51 = arith.constant dense<0.000000e+00> : vector<8x128xf32>
    %57 = tpu.matmul %50, %3, %cst_51 {dimension_numbers = #tpu.dot_dimension_numbers<[1], [0], [0], [1], [0, 0, 1, 1], [], []>} : vector<8x128xf32>, vector<128x128xf32>, vector<8x128xf32> -> vector<8x128xf32>
    %58 = arith.addf %57, %56 : vector<8x128xf32>
    %c6_52 = arith.constant 6 : index
    %c0_53 = arith.constant 0 : index
    %c0_54 = arith.constant 0 : index
    %59 = vector.load %arg4[%c6_52, %c0_53, %c0_54] : memref<8x8x128xf32, #tpu.memory_space<vmem>>, vector<1x8x128xf32>
    %60 = vector.shape_cast %59 : vector<1x8x128xf32> to vector<8x128xf32>
    %61 = vector.shape_cast %58 : vector<8x128xf32> to vector<1x8x128xf32>
    tpu.vector_store %arg4[%c6_52, %c0_53, %c0_54], %61 {strides = array<i32>} : memref<8x8x128xf32, #tpu.memory_space<vmem>>, vector<1x8x128xf32>,
    %c7 = arith.constant 7 : index
    %c0_55 = arith.constant 0 : index
    %c0_56 = arith.constant 0 : index
    %62 = vector.load %arg1[%c7, %c0_55, %c0_56] : memref<8x8x8xf32, #tpu.memory_space<vmem>>, vector<1x8x8xf32>
    %63 = vector.shape_cast %62 : vector<1x8x8xf32> to vector<8x8xf32>
    %cst_57 = arith.constant dense<0.000000e+00> : vector<8x128xf32>
    %64 = tpu.matmul %63, %4, %cst_57 {dimension_numbers = #tpu.dot_dimension_numbers<[1], [0], [0], [1], [0, 0, 1, 1], [], []>} : vector<8x8xf32>, vector<8x128xf32>, vector<8x128xf32> -> vector<8x128xf32>
    %cst_58 = arith.constant dense<0.000000e+00> : vector<8x128xf32>
    %65 = tpu.matmul %58, %3, %cst_58 {dimension_numbers = #tpu.dot_dimension_numbers<[1], [0], [0], [1], [0, 0, 1, 1], [], []>} : vector<8x128xf32>, vector<128x128xf32>, vector<8x128xf32> -> vector<8x128xf32>
    %66 = arith.addf %65, %64 : vector<8x128xf32>
    %c7_59 = arith.constant 7 : index
    %c0_60 = arith.constant 0 : index
    %c0_61 = arith.constant 0 : index
    %67 = vector.load %arg4[%c7_59, %c0_60, %c0_61] : memref<8x8x128xf32, #tpu.memory_space<vmem>>, vector<1x8x128xf32>
    %68 = vector.shape_cast %67 : vector<1x8x128xf32> to vector<8x128xf32>
    %69 = vector.shape_cast %66 : vector<8x128xf32> to vector<1x8x128xf32>
    tpu.vector_store %arg4[%c7_59, %c0_60, %c0_61], %69 {strides = array<i32>} : memref<8x8x128xf32, #tpu.memory_space<vmem>>, vector<1x8x128xf32>,
    %c0_62 = arith.constant 0 : index
    %c0_63 = arith.constant 0 : index
    %70 = vector.load %arg5[%c0_62, %c0_63] : memref<8x128xf32, #tpu.memory_space<vmem>>, vector<8x128xf32>
    tpu.vector_store %arg5[%c0_62, %c0_63], %66 {strides = array<i32>} : memref<8x128xf32, #tpu.memory_space<vmem>>, vector<8x128xf32>,
    return
  }
  func.func @transform_0(%arg0: i32) -> (i32, i32, i32) {
    %c0_i32 = arith.constant 0 : i32
    %c0_i32_0 = arith.constant 0 : i32
    %c0_i32_1 = arith.constant 0 : i32
    return %arg0, %c0_i32, %c0_i32_0 : i32, i32, i32
  }
  func.func @transform_1(%arg0: i32) -> (i32, i32) {
    %c0_i32 = arith.constant 0 : i32
    %c0_i32_0 = arith.constant 0 : i32
    %c0_i32_1 = arith.constant 0 : i32
    return %c0_i32, %c0_i32_0 : i32, i32
  }
  func.func @transform_2(%arg0: i32) -> (i32, i32) {
    %c0_i32 = arith.constant 0 : i32
    %c0_i32_0 = arith.constant 0 : i32
    %c0_i32_1 = arith.constant 0 : i32
    return %c0_i32, %c0_i32_0 : i32, i32
  }
  func.func @transform_3(%arg0: i32) -> (i32, i32, i32) {
    %c0_i32 = arith.constant 0 : i32
    %c0_i32_0 = arith.constant 0 : i32
    %c0_i32_1 = arith.constant 0 : i32
    return %arg0, %c0_i32, %c0_i32_0 : i32, i32, i32
  }
}

</mosaic_0001>

<bundles_post_ra>
// kernel: esn_forward.1
= control target key start
LH: loop header
LB: loop body
LE: loop exit
PB: predicated region body
PF: predicated region fallthrough
CT: control target
= control target key end

     0   :  { %vm38_vm0 = vcmask 64512   ;;  %v1922_v0 = vmov 0.0   ;;  %vm1923_vm1 = vmmov 0   ;;  %v1924_v7 = vmov 0.0|0.0   ;;  %s2247_s1 = inlined_call_operand.vmem [shape: f32[8,128], index: 1, kind: input, shape index: {}]   ;;  %s2248_s0 = inlined_call_operand.vmem [shape: f32[8,8,8], index: 0, kind: input, shape index: {}]   ;;  %s2249_s2 = inlined_call_operand.vmem [shape: f32[128,128], index: 2, kind: input, shape index: {}]   ;;  %s2250_s3 = inlined_call_operand.vmem [shape: f32[8,8,128], index: 3, kind: output, shape index: {}]  }
   0x1   :  { %1391 = vmatprep.subr.mxu0 %v1922_v0  ;;  %v1949_v1 = vld [vmem:[%s2247_s1] sm:$0xff]  ;;  %1393 = vmatprep.mubr.msk.f32.mxu0 %vm1923_vm1, %v1922_v0  ;;  %v20_v4 = vld [vmem:[%s2249_s2 + $0x8] sm:$0xff]  ;;  %v21_v5 = vld [vmem:[%s2249_s2 + $0x10] sm:$0xff] }
   0x2   :  { %v37_v2 = vld [vmem:[%s2248_s0] sm:$0xff]  ;;  %1392 = vmatpush3.msra.mxu0 %v1949_v1  ;;  %v22_v6 = vld [vmem:[%s2249_s2 + $0x18] sm:$0xff]  ;;  %1431 = vmatprep.subr.mxu1 %v1922_v0  ;;  %v24_v11 = vld [vmem:[%s2249_s2 + $0x28] sm:$0xff] }
   0x3   :  { %v19_v3 = vld [vmem:[%s2249_s2] sm:$0xff]  ;;  %1711 = vmatprep.subr.bf16.mxu0 %v1924_v7  ;;  %1394 = vmatmul.mubr.msk.f32.vlgmr.msra.gmra.mrb[0].mxu0 %vm38_vm0, %v37_v2  ;;  %v1978_v9 = vpack.c.bf16 %v22_v6, %v21_v5  ;;  %v1218_v12 = vld [vmem:[%s2248_s0 + $0x8] sm:$0xff]  ;;  %v25_v14 = vld [vmem:[%s2249_s2 + $0x30] sm:$0xff] }
   0x4   :  { %v1972_v8 = vpack.c.bf16 %v20_v4, %v19_v3  ;;  %1428 = vmatprep.mubr.msk.f32.mxu0 %vm1923_vm1, %v1922_v0  ;;  %1432 = vmatpush3.msra.mxu1 %v1949_v1  ;;  %v23_v10 = vld [vmem:[%s2249_s2 + $0x20] sm:$0xff]  ;;  %v26_v15 = vld [vmem:[%s2249_s2 + $0x38] sm:$0xff]  ;;  %v28_v18 = vld [vmem:[%s2249_s2 + $0x48] sm:$0xff] }
   0x5   :  { %1433 = vmatprep.mubr.msk.f32.mxu1 %vm1923_vm1, %v1922_v0  ;;  %1735 = vmatprep.subr.bf16.mxu1 %v1924_v7  ;;  %v1995_v13 = vpack.c.bf16 %v24_v11, %v23_v10  ;;  %v2009_v16 = vpack.c.bf16 %v26_v15, %v25_v14  ;;  %v27_v17 = vld [vmem:[%s2249_s2 + $0x40] sm:$0xff]  ;;  %v29_v20 = vld [vmem:[%s2249_s2 + $0x50] sm:$0xff]  ;;  %v30_v21 = vld [vmem:[%s2249_s2 + $0x58] sm:$0xff] }
   0x6   :  { %1713 = vmatpush3.bf16.msra.mxu0 %v1972_v8  ;;  %1434 = vmatmul.mubr.msk.f32.vlgmr.msra.gmra.mrb[0].mxu1 %vm38_vm0, %v1218_v12  ;;  %v2021_v19 = vpack.c.bf16 %v28_v18, %v27_v17  ;;  %v2033_v22 = vpack.c.bf16 %v30_v21, %v29_v20  ;;  %v31_v23 = vld [vmem:[%s2249_s2 + $0x60] sm:$0xff]  ;;  %v32_v24 = vld [vmem:[%s2249_s2 + $0x68] sm:$0xff]  ;;  %v33_v26 = vld [vmem:[%s2249_s2 + $0x70] sm:$0xff] }
   0x7   :  { %1714 = vmatprep.subr.bf16.mxu0 %v1924_v7  ;;  %1737 = vmatpush3.bf16.msra.mxu1 %v1972_v8  ;;  %v2045_v25 = vpack.c.bf16 %v32_v24, %v31_v23  ;;  %v34_v27 = vld [vmem:[%s2249_s2 + $0x78] sm:$0xff]  ;;  %v1221_v29 = vld [vmem:[%s2248_s0 + $0x10] sm:$0xff]  ;;  %v1227_v35 = vld [vmem:[%s2248_s0 + $0x20] sm:$0xff] }
   0x8   :  { %1738 = vmatprep.subr.bf16.mxu1 %v1924_v7  ;;  %1468 = vmatprep.mubr.msk.f32.mxu1 %vm1923_vm1, %v1922_v0  ;;  %v2057_v28 = vpack.c.bf16 %v34_v27, %v33_v26  ;;  %v1224_v32 = vld [vmem:[%s2248_s0 + $0x18] sm:$0xff]  ;;  %v1230_v38 = vld [vmem:[%s2248_s0 + $0x28] sm:$0xff]  ;;  %v1233_v41 = vld [vmem:[%s2248_s0 + $0x30] sm:$0xff] }
   0x9   :  { %v1236_v44 = vld [vmem:[%s2248_s0 + $0x38] sm:$0xff] }
   0xa   :  { %1716 = vmatpush3.bf16.msra.mxu0 %v1978_v9 }
   0xb   :  { %1717 = vmatprep.subr.bf16.mxu0 %v1924_v7  ;;  %1740 = vmatpush3.bf16.msra.mxu1 %v1978_v9 }
   0xc   :  { %1741 = vmatprep.subr.bf16.mxu1 %v1924_v7 }
   0xe   :  { %1719 = vmatpush3.bf16.msra.mxu0 %v1995_v13 }
   0xf   :  { %1720 = vmatprep.subr.bf16.mxu0 %v1924_v7  ;;  %1743 = vmatpush3.bf16.msra.mxu1 %v1995_v13 }
  0x10   :  { %1744 = vmatprep.subr.bf16.mxu1 %v1924_v7 }
  0x12   :  { %1722 = vmatpush3.bf16.msra.mxu0 %v2009_v16 }
  0x13   :  { %1723 = vmatprep.subr.bf16.mxu0 %v1924_v7  ;;  %1746 = vmatpush3.bf16.msra.mxu1 %v2009_v16 }
  0x14   :  { %1747 = vmatprep.subr.bf16.mxu1 %v1924_v7 }
  0x16   :  { %1725 = vmatpush3.bf16.msra.mxu0 %v2021_v19 }
  0x17   :  { %1726 = vmatprep.subr.bf16.mxu0 %v1924_v7  ;;  %1749 = vmatpush3.bf16.msra.mxu1 %v2021_v19 }
  0x18   :  { %1750 = vmatprep.subr.bf16.mxu1 %v1924_v7 }
  0x1a   :  { %1728 = vmatpush3.bf16.msra.mxu0 %v2033_v22 }
  0x1b   :  { %1729 = vmatprep.subr.bf16.mxu0 %v1924_v7  ;;  %1752 = vmatpush3.bf16.msra.mxu1 %v2033_v22 }
  0x1c   :  { %1753 = vmatprep.subr.bf16.mxu1 %v1924_v7 }
  0x1e   :  { %1731 = vmatpush3.bf16.msra.mxu0 %v2045_v25 }
  0x1f   :  { %1732 = vmatprep.subr.bf16.mxu0 %v1924_v7  ;;  %1755 = vmatpush3.bf16.msra.mxu1 %v2045_v25 }
  0x20   :  { %1756 = vmatprep.subr.bf16.mxu1 %v1924_v7 }
  0x22   :  { %1734 = vmatpush3.bf16.msra.mxu0 %v2057_v28 }
  0x23   :  { %1471 = vmatprep.subr.mxu0 %v1922_v0  ;;  %1758 = vmatpush3.bf16.msra.mxu1 %v2057_v28 }
  0x24   :  { %1511 = vmatprep.subr.mxu1 %v1922_v0 }
  0x25   :  { %1429 = vmatmul.mubr.f32.vlgmr.msra.gmra.mrb[0].mxu0 %v1922_v0 }
  0x26   :  { %1472 = vmatpush3.msra.mxu0 %v1949_v1  ;;  %1473 = vmatprep.mubr.msk.f32.mxu0 %vm1923_vm1, %v1922_v0 }
  0x27   :  { %1759 = vmatprep.subr.bf16.mxu0 %v1924_v7 }
  0x29   :  { %1474 = vmatmul.mubr.msk.f32.vlgmr.msra.gmra.mrb[2].mxu0 %vm38_vm0, %v1221_v29 }
  0x2a   :  { %1761 = vmatpush3.bf16.msra.mxu0 %v1972_v8  ;;  %1508 = vmatprep.mubr.msk.f32.mxu0 %vm1923_vm1, %v1922_v0 }
  0x2b   :  { %1762 = vmatprep.subr.bf16.mxu0 %v1924_v7 }
  0x2e   :  { %1764 = vmatpush3.bf16.msra.mxu0 %v1978_v9 }
  0x2f   :  { %1765 = vmatprep.subr.bf16.mxu0 %v1924_v7 }
  0x32   :  { %1767 = vmatpush3.bf16.msra.mxu0 %v1995_v13 }
  0x33   :  { %1768 = vmatprep.subr.bf16.mxu0 %v1924_v7 }
  0x36   :  { %1770 = vmatpush3.bf16.msra.mxu0 %v2009_v16 }
  0x37   :  { %1771 = vmatprep.subr.bf16.mxu0 %v1924_v7 }
  0x3a   :  { %1773 = vmatpush3.bf16.msra.mxu0 %v2021_v19 }
  0x3b   :  { %1774 = vmatprep.subr.bf16.mxu0 %v1924_v7 }
  0x3e   :  { %1776 = vmatpush3.bf16.msra.mxu0 %v2033_v22 }
  0x3f   :  { %1777 = vmatprep.subr.bf16.mxu0 %v1924_v7 }
  0x42   :  { %1779 = vmatpush3.bf16.msra.mxu0 %v2045_v25 }
  0x43   :  { %1780 = vmatprep.subr.bf16.mxu0 %v1924_v7 }
  0x46   :  { %1782 = vmatpush3.bf16.msra.mxu0 %v2057_v28 }
  0x47   :  { %1551 = vmatprep.subr.mxu0 %v1922_v0 }
  0xf8   :  { %v178_v30 = vpop.f32.mrb[0].mxu0 }
  0xf9   :  { %182 = vst [vmem:[%s2250_s3] sm:$0xff] %v178_v30  ;;  %v1430_v31 = vpop.f32.mrb[1].mxu0  ;;  %1469 = vmatmul.mubr.f32.vlgmr.msra.gmra.mrb[0].mxu1 %v178_v30 }
  0xfa   :  { %1512 = vmatpush3.msra.mxu1 %v1949_v1  ;;  %1513 = vmatprep.mubr.msk.f32.mxu1 %vm1923_vm1, %v1922_v0 }
  0xfb   :  { %1783 = vmatprep.subr.bf16.mxu1 %v1924_v7 }
  0xfd   :  { %1514 = vmatmul.mubr.msk.f32.vlgmr.msra.gmra.mrb[2].mxu1 %vm38_vm0, %v1224_v32 }
  0xfe   :  { %1785 = vmatpush3.bf16.msra.mxu1 %v1972_v8  ;;  %1548 = vmatprep.mubr.msk.f32.mxu1 %vm1923_vm1, %v1922_v0 }
  0xff   :  { %1786 = vmatprep.subr.bf16.mxu1 %v1924_v7 }
 0x102   :  { %1788 = vmatpush3.bf16.msra.mxu1 %v1978_v9 }
 0x103   :  { %1789 = vmatprep.subr.bf16.mxu1 %v1924_v7 }
 0x106   :  { %1791 = vmatpush3.bf16.msra.mxu1 %v1995_v13 }
 0x107   :  { %1792 = vmatprep.subr.bf16.mxu1 %v1924_v7 }
 0x10a   :  { %1794 = vmatpush3.bf16.msra.mxu1 %v2009_v16 }
 0x10b   :  { %1795 = vmatprep.subr.bf16.mxu1 %v1924_v7 }
 0x10e   :  { %1797 = vmatpush3.bf16.msra.mxu1 %v2021_v19 }
 0x10f   :  { %1798 = vmatprep.subr.bf16.mxu1 %v1924_v7 }
 0x112   :  { %1800 = vmatpush3.bf16.msra.mxu1 %v2033_v22 }
 0x113   :  { %1801 = vmatprep.subr.bf16.mxu1 %v1924_v7 }
 0x116   :  { %1803 = vmatpush3.bf16.msra.mxu1 %v2045_v25 }
 0x117   :  { %1804 = vmatprep.subr.bf16.mxu1 %v1924_v7 }
 0x11a   :  { %1806 = vmatpush3.bf16.msra.mxu1 %v2057_v28 }
 0x11b   :  { %1591 = vmatprep.subr.mxu1 %v1922_v0 }
 0x1cc   :  { %v324_v33 = vpop.f32.mrb[0].mxu1 }
 0x1cd   :  { %1220 = vst [vmem:[%s2250_s3 + $0x8] sm:$0xff] %v324_v33  ;;  %v1470_v34 = vpop.f32.mrb[1].mxu1  ;;  %1509 = vmatmul.mubr.f32.vlgmr.msra.gmra.mrb[2].mxu0 %v324_v33 }
 0x1ce   :  { %1552 = vmatpush3.msra.mxu0 %v1949_v1  ;;  %1553 = vmatprep.mubr.msk.f32.mxu0 %vm1923_vm1, %v1922_v0 }
 0x1cf   :  { %1807 = vmatprep.subr.bf16.mxu0 %v1924_v7 }
 0x1d1   :  { %1554 = vmatmul.mubr.msk.f32.vlgmr.msra.gmra.mrb[4].mxu0 %vm38_vm0, %v1227_v35 }
 0x1d2   :  { %1809 = vmatpush3.bf16.msra.mxu0 %v1972_v8  ;;  %1588 = vmatprep.mubr.msk.f32.mxu0 %vm1923_vm1, %v1922_v0 }
 0x1d3   :  { %1810 = vmatprep.subr.bf16.mxu0 %v1924_v7 }
 0x1d6   :  { %1812 = vmatpush3.bf16.msra.mxu0 %v1978_v9 }
 0x1d7   :  { %1813 = vmatprep.subr.bf16.mxu0 %v1924_v7 }
 0x1da   :  { %1815 = vmatpush3.bf16.msra.mxu0 %v1995_v13 }
 0x1db   :  { %1816 = vmatprep.subr.bf16.mxu0 %v1924_v7 }
 0x1de   :  { %1818 = vmatpush3.bf16.msra.mxu0 %v2009_v16 }
 0x1df   :  { %1819 = vmatprep.subr.bf16.mxu0 %v1924_v7 }
 0x1e2   :  { %1821 = vmatpush3.bf16.msra.mxu0 %v2021_v19 }
 0x1e3   :  { %1822 = vmatprep.subr.bf16.mxu0 %v1924_v7 }
 0x1e6   :  { %1824 = vmatpush3.bf16.msra.mxu0 %v2033_v22 }
 0x1e7   :  { %1825 = vmatprep.subr.bf16.mxu0 %v1924_v7 }
 0x1ea   :  { %1827 = vmatpush3.bf16.msra.mxu0 %v2045_v25 }
 0x1eb   :  { %1828 = vmatprep.subr.bf16.mxu0 %v1924_v7 }
 0x1ee   :  { %1830 = vmatpush3.bf16.msra.mxu0 %v2057_v28 }
 0x1ef   :  { %1631 = vmatprep.subr.mxu0 %v1922_v0 }
 0x2a0   :  { %v471_v36 = vpop.f32.mrb[2].mxu0 }
 0x2a1   :  { %1223 = vst [vmem:[%s2250_s3 + $0x10] sm:$0xff] %v471_v36  ;;  %v1510_v37 = vpop.f32.mrb[3].mxu0  ;;  %1549 = vmatmul.mubr.f32.vlgmr.msra.gmra.mrb[2].mxu1 %v471_v36 }
 0x2a2   :  { %1592 = vmatpush3.msra.mxu1 %v1949_v1  ;;  %1593 = vmatprep.mubr.msk.f32.mxu1 %vm1923_vm1, %v1922_v0 }
 0x2a3   :  { %1831 = vmatprep.subr.bf16.mxu1 %v1924_v7 }
 0x2a5   :  { %1594 = vmatmul.mubr.msk.f32.vlgmr.msra.gmra.mrb[4].mxu1 %vm38_vm0, %v1230_v38 }
 0x2a6   :  { %1833 = vmatpush3.bf16.msra.mxu1 %v1972_v8  ;;  %1628 = vmatprep.mubr.msk.f32.mxu1 %vm1923_vm1, %v1922_v0 }
 0x2a7   :  { %1834 = vmatprep.subr.bf16.mxu1 %v1924_v7 }
 0x2aa   :  { %1836 = vmatpush3.bf16.msra.mxu1 %v1978_v9 }
 0x2ab   :  { %1837 = vmatprep.subr.bf16.mxu1 %v1924_v7 }
 0x2ae   :  { %1839 = vmatpush3.bf16.msra.mxu1 %v1995_v13 }
 0x2af   :  { %1840 = vmatprep.subr.bf16.mxu1 %v1924_v7 }
 0x2b2   :  { %1842 = vmatpush3.bf16.msra.mxu1 %v2009_v16 }
 0x2b3   :  { %1843 = vmatprep.subr.bf16.mxu1 %v1924_v7 }
 0x2b6   :  { %1845 = vmatpush3.bf16.msra.mxu1 %v2021_v19 }
 0x2b7   :  { %1846 = vmatprep.subr.bf16.mxu1 %v1924_v7 }
 0x2ba   :  { %1848 = vmatpush3.bf16.msra.mxu1 %v2033_v22 }
 0x2bb   :  { %1849 = vmatprep.subr.bf16.mxu1 %v1924_v7 }
 0x2be   :  { %1851 = vmatpush3.bf16.msra.mxu1 %v2045_v25 }
 0x2bf   :  { %1852 = vmatprep.subr.bf16.mxu1 %v1924_v7 }
 0x2c2   :  { %1854 = vmatpush3.bf16.msra.mxu1 %v2057_v28 }
 0x2c3   :  { %1671 = vmatprep.subr.mxu1 %v1922_v0 }
 0x374   :  { %v618_v39 = vpop.f32.mrb[2].mxu1 }
 0x375   :  { %1226 = vst [vmem:[%s2250_s3 + $0x18] sm:$0xff] %v618_v39  ;;  %v1550_v40 = vpop.f32.mrb[3].mxu1  ;;  %1589 = vmatmul.mubr.f32.vlgmr.msra.gmra.mrb[4].mxu0 %v618_v39 }
 0x376   :  { %1632 = vmatpush3.msra.mxu0 %v1949_v1  ;;  %1633 = vmatprep.mubr.msk.f32.mxu0 %vm1923_vm1, %v1922_v0 }
 0x377   :  { %1855 = vmatprep.subr.bf16.mxu0 %v1924_v7 }
 0x379   :  { %1634 = vmatmul.mubr.msk.f32.vlgmr.msra.gmra.mrb[6].mxu0 %vm38_vm0, %v1233_v41 }
 0x37a   :  { %1857 = vmatpush3.bf16.msra.mxu0 %v1972_v8  ;;  %1668 = vmatprep.mubr.msk.f32.mxu0 %vm1923_vm1, %v1922_v0 }
 0x37b   :  { %1858 = vmatprep.subr.bf16.mxu0 %v1924_v7 }
 0x37e   :  { %1860 = vmatpush3.bf16.msra.mxu0 %v1978_v9 }
 0x37f   :  { %1861 = vmatprep.subr.bf16.mxu0 %v1924_v7 }
 0x382   :  { %1863 = vmatpush3.bf16.msra.mxu0 %v1995_v13 }
 0x383   :  { %1864 = vmatprep.subr.bf16.mxu0 %v1924_v7 }
 0x386   :  { %1866 = vmatpush3.bf16.msra.mxu0 %v2009_v16 }
 0x387   :  { %1867 = vmatprep.subr.bf16.mxu0 %v1924_v7 }
 0x38a   :  { %1869 = vmatpush3.bf16.msra.mxu0 %v2021_v19 }
 0x38b   :  { %1870 = vmatprep.subr.bf16.mxu0 %v1924_v7 }
 0x38e   :  { %1872 = vmatpush3.bf16.msra.mxu0 %v2033_v22 }
 0x38f   :  { %1873 = vmatprep.subr.bf16.mxu0 %v1924_v7 }
 0x392   :  { %1875 = vmatpush3.bf16.msra.mxu0 %v2045_v25 }
 0x393   :  { %1876 = vmatprep.subr.bf16.mxu0 %v1924_v7 }
 0x396   :  { %1878 = vmatpush3.bf16.msra.mxu0 %v2057_v28 }
 0x448   :  { %v765_v42 = vpop.f32.mrb[4].mxu0 }
 0x449   :  { %1229 = vst [vmem:[%s2250_s3 + $0x20] sm:$0xff] %v765_v42  ;;  %v1590_v43 = vpop.f32.mrb[5].mxu0  ;;  %1629 = vmatmul.mubr.f32.vlgmr.msra.gmra.mrb[4].mxu1 %v765_v42 }
 0x44a   :  { %1672 = vmatpush3.msra.mxu1 %v1949_v1  ;;  %1673 = vmatprep.mubr.msk.f32.mxu1 %vm1923_vm1, %v1922_v0 }
 0x44b   :  { %1879 = vmatprep.subr.bf16.mxu1 %v1924_v7 }
 0x44d   :  { %1674 = vmatmul.mubr.msk.f32.vlgmr.msra.gmra.mrb[6].mxu1 %vm38_vm0, %v1236_v44 }
 0x44e   :  { %1881 = vmatpush3.bf16.msra.mxu1 %v1972_v8  ;;  %1708 = vmatprep.mubr.msk.f32.mxu1 %vm1923_vm1, %v1922_v0 }
 0x44f   :  { %1882 = vmatprep.subr.bf16.mxu1 %v1924_v7 }
 0x452   :  { %1884 = vmatpush3.bf16.msra.mxu1 %v1978_v9 }
 0x453   :  { %1885 = vmatprep.subr.bf16.mxu1 %v1924_v7 }
 0x456   :  { %1887 = vmatpush3.bf16.msra.mxu1 %v1995_v13 }
 0x457   :  { %1888 = vmatprep.subr.bf16.mxu1 %v1924_v7 }
 0x45a   :  { %1890 = vmatpush3.bf16.msra.mxu1 %v2009_v16 }
 0x45b   :  { %1891 = vmatprep.subr.bf16.mxu1 %v1924_v7 }
 0x45e   :  { %1893 = vmatpush3.bf16.msra.mxu1 %v2021_v19 }
 0x45f   :  { %1894 = vmatprep.subr.bf16.mxu1 %v1924_v7 }
 0x462   :  { %1896 = vmatpush3.bf16.msra.mxu1 %v2033_v22 }
 0x463   :  { %1897 = vmatprep.subr.bf16.mxu1 %v1924_v7 }
 0x466   :  { %1899 = vmatpush3.bf16.msra.mxu1 %v2045_v25 }
 0x467   :  { %1900 = vmatprep.subr.bf16.mxu1 %v1924_v7 }
 0x46a   :  { %1902 = vmatpush3.bf16.msra.mxu1 %v2057_v28 }
 0x51c   :  { %v912_v45 = vpop.f32.mrb[4].mxu1 }
 0x51d   :  { %1232 = vst [vmem:[%s2250_s3 + $0x28] sm:$0xff] %v912_v45  ;;  %v1630_v46 = vpop.f32.mrb[5].mxu1  ;;  %1669 = vmatmul.mubr.f32.vlgmr.msra.gmra.mrb[6].mxu0 %v912_v45 }
 0x5f0   :  { %v1059_v47 = vpop.f32.mrb[6].mxu0 }
 0x5f1   :  { %1235 = vst [vmem:[%s2250_s3 + $0x30] sm:$0xff] %v1059_v47  ;;  %v1670_v48 = vpop.f32.mrb[7].mxu0  ;;  %1709 = vmatmul.mubr.f32.vlgmr.msra.gmra.mrb[6].mxu1 %v1059_v47 }
 0x6c4   :  { %v1206_v49 = vpop.f32.mrb[6].mxu1 }
 0x6c5   :  { %1238 = vst [vmem:[%s2250_s3 + $0x38] sm:$0xff] %v1206_v49  ;;  %v1710_v50 = vpop.f32.mrb[7].mxu1 }

</bundles_post_ra>
